<compile_context>
chip_gen: v5e
topology: v5e:2x2
jax: 0.10.0
libtpu: 0.0.40
codegen_flags: <defaults>
</compile_context>

<pallas_src>
import jax
import jax.numpy as jnp
from jax.experimental import pallas as pl
from jax.experimental.pallas import tpu as pltpu

SUBLANE = 8                 # f32 sublane granularity
_PALLAS_MIN_MACS = 1_000_000  # below this, XLA fusion beats pallas_call fixed cost


def _round_up(n, m):
    return (n + m - 1) // m * m


def linear_relu_kernel(x_ref, w_ref, b_ref, o_ref):
    # x_ref: (TB, Din)  w_ref: (Din, Dout)  b_ref: (1, Dout) f32  o_ref: (TB, Dout)
    x = x_ref[...].astype(w_ref.dtype)   # bf16 on the MXU when the bf16 path is used
    y = jnp.dot(x, w_ref[...], preferred_element_type=jnp.float32)
    y = y + b_ref[...]                   # f32 bias add (VPU)
    o_ref[...] = jnp.maximum(y, 0.0).astype(o_ref.dtype)


def prepare_linear_params(weight, bias, compute_dtype=jnp.bfloat16):
    """One-time parameter prep (init time, NOT per forward).

    W (out, in) -> W^T (in, out) in the MXU compute dtype; bias -> (1, out) f32.
    No padding: Din/Dout blocks use the full array extent, so loads/stores need
    no pad copies and the output needs no trailing slice.
    """
    w_t = weight.T.astype(compute_dtype)            # (Din, Dout)
    b2d = bias.reshape(1, -1).astype(jnp.float32)   # (1, Dout)
    return w_t, b2d


@jax.jit
def _fused_linear_relu_pallas(x, w_t, b2d):
    B, din = x.shape
    din_w, dout = w_t.shape
    assert din_w == din, "prepared weight does not match activation feature dim"

    # Batch tile: large enough to amortize the ~0.35us/step grid overhead,
    # sublane-aligned; partial last tile handled by the cdiv grid (masked).
    tb = B if B <= SUBLANE else min(1024, _round_up(B, SUBLANE))
    grid = (pl.cdiv(B, tb),)

    flops = 2 * B * din * dout
    bytes_accessed = (
        B * din * x.dtype.itemsize          # x read
        + din * dout * w_t.dtype.itemsize   # W read (fetched once: constant index_map)
        + dout * 4                          # bias read
        + B * dout * x.dtype.itemsize       # output write
    )

    return pl.pallas_call(
        linear_relu_kernel,
        out_shape=jax.ShapeDtypeStruct((B, dout), x.dtype),
        grid=grid,
        in_specs=[
            pl.BlockSpec((tb, din), lambda i: (i, 0),
                         memory_space=pltpu.MemorySpace.VMEM),
            pl.BlockSpec((din, dout), lambda i: (0, 0),      # weight resident in VMEM
                         memory_space=pltpu.MemorySpace.VMEM),
            pl.BlockSpec((1, dout), lambda i: (0, 0),
                         memory_space=pltpu.MemorySpace.VMEM),
        ],
        out_specs=pl.BlockSpec((tb, dout), lambda i: (i, 0),
                               memory_space=pltpu.MemorySpace.VMEM),
        compiler_params=pltpu.CompilerParams(
            dimension_semantics=("parallel",),
        ),
        cost_estimate=pl.CostEstimate(
            flops=flops, transcendentals=0, bytes_accessed=bytes_accessed),
    )(x, w_t, b2d)


def custom_sequential_forward(x, w_t, b2d, temperature, *, force_pallas=False):
    """CustomSequential(Linear, ReLU, TempModule).forward(x, temperature).

    TempModule is identity w.r.t. x; `temperature` is threaded through but unused.
    """
    del temperature
    B, din = x.shape
    dout = w_t.shape[1]
    if force_pallas or B * din * dout >= _PALLAS_MIN_MACS:
        return _fused_linear_relu_pallas(x, w_t, b2d)
    # Tiny problems: pallas_call fixed cost dominates -> let XLA fuse it.
    return jnp.maximum(
        jnp.dot(x.astype(w_t.dtype), w_t, preferred_element_type=jnp.float32) + b2d[0],
        0.0).astype(x.dtype)


if __name__ == "__main__":
    key = jax.random.PRNGKey(0)
    k_x, k_w, k_b = jax.random.split(key, 3)

    batch, hidden = 8, 32
    x = jax.random.normal(k_x, (batch, hidden), dtype=jnp.float32)
    # nn.Linear(32, 32) shapes: W (out, in), b (out,)
    weight = jax.random.normal(k_w, (hidden, hidden), dtype=jnp.float32) / jnp.sqrt(hidden)
    bias = jax.random.normal(k_b, (hidden,), dtype=jnp.float32) * 0.01
    temperature = 2.0

    ref_f32 = jnp.maximum(x @ weight.T + bias, 0.0)

    # --- f32-MXU Pallas path (strict precision), forced so the kernel runs at this size ---
    w_t_f32, b2d = prepare_linear_params(weight, bias, compute_dtype=jnp.float32)
    out_f32 = jax.block_until_ready(
        custom_sequential_forward(x, w_t_f32, b2d, temperature, force_pallas=True))
    assert out_f32.shape == (batch, hidden)
    assert jnp.allclose(out_f32, ref_f32, atol=1e-5, rtol=1e-5)

    # --- bf16-MXU Pallas path (v5e/v6e/v7x MXU-native inputs, f32 accumulate) ---
    w_t_bf16, _ = prepare_linear_params(weight, bias, compute_dtype=jnp.bfloat16)
    out_bf16 = jax.block_until_ready(
        custom_sequential_forward(x, w_t_bf16, b2d, temperature, force_pallas=True))
    ref_bf16 = jnp.maximum(
        jnp.dot(x.astype(jnp.bfloat16), weight.T.astype(jnp.bfloat16),
                preferred_element_type=jnp.float32) + bias, 0.0)
    assert jnp.allclose(out_bf16, ref_bf16, atol=1e-2, rtol=1e-2)
    assert jnp.allclose(out_bf16, ref_f32, atol=5e-2, rtol=5e-2)

    # --- dispatch path: at this tiny size it takes the plain-XLA branch ---
    out_small = jax.block_until_ready(
        custom_sequential_forward(x, w_t_f32, b2d, temperature))
    assert jnp.allclose(out_small, ref_f32, atol=1e-5, rtol=1e-5)

    print("KERNEL_OK")
</pallas_src>

<mosaic_0001>
module attributes {stable_mosaic.version = 11 : i64} {
  func.func @linear_relu_kernel(%arg0: i32, %arg1: memref<8x32xf32, #tpu.memory_space<vmem>>, %arg2: memref<32x32xf32, #tpu.memory_space<vmem>>, %arg3: memref<1x32xf32, #tpu.memory_space<vmem>>, %arg4: memref<8x32xf32, #tpu.memory_space<vmem>>) attributes {dimension_semantics = [#tpu.dimension_semantics<parallel>], iteration_bounds = array<i64: 1>, scalar_prefetch = 0 : i64, scratch_operands = 0 : i64, tpu.core_type = #tpu.core_type<tc>, window_params = [{transform_indices = @transform_0, window_bounds = array<i64: 8, 32>}, {pipeline_mode = #tpu.pipeline_mode<synchronous>, transform_indices = @transform_1, window_bounds = array<i64: 32, 32>}, {pipeline_mode = #tpu.pipeline_mode<synchronous>, transform_indices = @transform_2, window_bounds = array<i64: 1, 32>}, {transform_indices = @transform_3, window_bounds = array<i64: 8, 32>}]} {
    %c0 = arith.constant 0 : index
    %c0_0 = arith.constant 0 : index
    %0 = vector.load %arg1[%c0, %c0_0] : memref<8x32xf32, #tpu.memory_space<vmem>>, vector<8x32xf32>
    %c0_1 = arith.constant 0 : index
    %c0_2 = arith.constant 0 : index
    %1 = vector.load %arg2[%c0_1, %c0_2] : memref<32x32xf32, #tpu.memory_space<vmem>>, vector<32x32xf32>
    %cst = arith.constant dense<0.000000e+00> : vector<8x32xf32>
    %2 = tpu.matmul %0, %1, %cst {dimension_numbers = #tpu.dot_dimension_numbers<[1], [0], [0], [1], [0, 0, 1, 1], [], []>} : vector<8x32xf32>, vector<32x32xf32>, vector<8x32xf32> -> vector<8x32xf32>
    %c0_3 = arith.constant 0 : index
    %c0_4 = arith.constant 0 : index
    %3 = vector.load %arg3[%c0_3, %c0_4] : memref<1x32xf32, #tpu.memory_space<vmem>>, vector<1x32xf32>
    %4 = vector.broadcast %3 : vector<1x32xf32> to vector<8x32xf32>
    %5 = arith.addf %2, %4 : vector<8x32xf32>
    %cst_5 = arith.constant 0.000000e+00 : f32
    %6 = vector.broadcast %cst_5 : f32 to vector<8x32xf32>
    %7 = arith.maximumf %5, %6 : vector<8x32xf32>
    %c0_6 = arith.constant 0 : index
    %c0_7 = arith.constant 0 : index
    %8 = vector.load %arg4[%c0_6, %c0_7] : memref<8x32xf32, #tpu.memory_space<vmem>>, vector<8x32xf32>
    tpu.vector_store %arg4[%c0_6, %c0_7], %7 {strides = array<i32>} : memref<8x32xf32, #tpu.memory_space<vmem>>, vector<8x32xf32>,
    return
  }
  func.func @transform_0(%arg0: i32) -> (i32, i32) {
    %c0_i32 = arith.constant 0 : i32
    %c0_i32_0 = arith.constant 0 : i32
    return %arg0, %c0_i32 : i32, i32
  }
  func.func @transform_1(%arg0: i32) -> (i32, i32) {
    %c0_i32 = arith.constant 0 : i32
    %c0_i32_0 = arith.constant 0 : i32
    %c0_i32_1 = arith.constant 0 : i32
    return %c0_i32, %c0_i32_0 : i32, i32
  }
  func.func @transform_2(%arg0: i32) -> (i32, i32) {
    %c0_i32 = arith.constant 0 : i32
    %c0_i32_0 = arith.constant 0 : i32
    %c0_i32_1 = arith.constant 0 : i32
    return %c0_i32, %c0_i32_0 : i32, i32
  }
  func.func @transform_3(%arg0: i32) -> (i32, i32) {
    %c0_i32 = arith.constant 0 : i32
    %c0_i32_0 = arith.constant 0 : i32
    return %arg0, %c0_i32 : i32, i32
  }
}

</mosaic_0001>

<bundles_post_ra>
// kernel: _fused_linear_relu_pallas.1
= control target key start
LH: loop header
LB: loop body
LE: loop exit
PB: predicated region body
PF: predicated region fallthrough
CT: control target
= control target key end

     0   :  { %8 = vsyncpa [#allocation3], 0  ;;  %s220_s0 = inlined_call_operand.hbm [shape: f32[8,32], index: 0, kind: input, shape index: {}]   ;;  %s221_s1 = inlined_call_operand.hbm [shape: f32[32,32], index: 1, kind: input, shape index: {}]   ;;  %s222_s2 = inlined_call_operand.vmem [shape: f32[1,32], index: 2, kind: input, shape index: {}]   ;;  %s223_s3 = inlined_call_operand.hbm [shape: f32[8,32], index: 3, kind: output, shape index: {}]  }
   0x1   :  { %9 = vsyncpa [#allocation6], 0 }
   0x2   :  { %10 = vsyncpa [#allocation4], 0  ;;  %s16_s14 = sshll.u32 %s220_s0, 4  ;;  %s183_s15 = smov [#allocation2]   ;;  %s17_s14 = int_to_ptr.hbm [resolvable:$true] %s16_s14 }
   0x3   :  { %s18_s16 = sshll.u32 %s183_s15, 4  ;;  %s26_s19 = sshll.u32 %s221_s1, 4  ;;  %s19_s16 = int_to_ptr.vmem [resolvable:$true] %s18_s16  ;;  %s27_s19 = int_to_ptr.hbm [resolvable:$true] %s26_s19 }
   0x4   :  { %21 = dma.hbm_to_vmem [thread:$0]  %s17_s14, 128, %s19_s16, [#allocation3]  }
   0x5   :  { %s184_s20 = smov [#allocation5]   ;;  %s185_s22 = smov 128  }
   0x6   :  { %s28_s21 = sshll.u32 %s184_s20, 4  ;;  %s186_s23 = smov 8   ;;  %s29_s21 = int_to_ptr.vmem [resolvable:$true] %s28_s21 }
   0x7   :  { %34 = dma.hbm_to_vmem [thread:$0]  %s27_s19, 512, %s29_s21, [#allocation6], %s185_s22, %s185_s22, %s186_s23  }
   0x8   :  { %177 = dma.done.wait [#allocation3], 128  }
   0x9   :  { %178 = vsyncadd [#allocation3], 4294967168 }
   0xa   :  { %179 = dma.done.wait [#allocation6], 512  }
   0xb   :  { %180 = vsyncadd [#allocation6], 4294966784  ;;  %v49_v0 = vld [vmem:[#allocation5 + $0x18] sm:$0xff]  ;;  %v48_v1 = vld [vmem:[#allocation5 + $0x10] sm:$0xff]  ;;  %vm54_vm0 = vcmask 261120   ;;  %s187_s24 = smov [#allocation7]  }
   0xc   :  { %70 = vmatpush.msra.mxu0 %v49_v0  ;;  %v47_v2 = vld [vmem:[#allocation5 + $0x8] sm:$0xff]  ;;  %v46_v3 = vld [vmem:[#allocation5] sm:$0xff]  ;;  %v45_v4 = vld [vmem:[#allocation2] sm:$0xff]  ;;  %s85_s25 = sshll.u32 %s187_s24, 4  ;;  %s87_s28 = sshll.u32 %s223_s3, 4  ;;  %s86_s25 = int_to_ptr.vmem [resolvable:$true] %s85_s25  ;;  %s88_s28 = int_to_ptr.hbm [resolvable:$true] %s87_s28 }
   0xd   :  { %v104_v5 = vld [vmem:[%s222_s2] ss:$0 sm:$0xff] }
   0xe   :  { %71 = vmatpush.msra.mxu0 %v48_v1 }
  0x10   :  { %72 = vmatpush.msra.mxu0 %v47_v2 }
  0x12   :  { %73 = vmatpush.msra.mxu0 %v46_v3 }
  0x13   :  { %98 = vmatmul.msk.f32.vlgmr.msra.gmra.mxu0 %vm54_vm0, %v45_v4 }
  0x90   :  { %v75_v6 = vpop.f32.mrf.mxu0 }
  0x91   :  { %v76_v7 = vadd.f32 %v104_v5, %v75_v6 }
  0x93   :  { %v78_v8 = vmax.f32 %v76_v7, 0.0 }
  0x95   :  { %79 = vst.msk [vmem:[#allocation7] sm:$0xff] %vm54_vm0, %v78_v8 }
  0x96   :  { %90 = dma.vmem_to_hbm [thread:$0]  %s86_s25, 128, %s88_s28, [#allocation4]  }
  0x97   :  { %181 = dma.done.wait [#allocation4], 128  }
  0x98   :  { %182 = vsyncadd [#allocation4], 4294967168 }
  0x99   :  { %95 = vsyncpa [#allocation3], 1 }
  0x9a   :  { %96 = vsyncpa [#allocation6], 1 }
  0x9b   :  { %97 = vsyncpa [#allocation4], 1 }

</bundles_post_ra>
